<compile_context>
chip_gen: v5e
topology: v5e:2x2
jax: 0.10.0
libtpu: 0.0.40
codegen_flags: <defaults>
</compile_context>

<pallas_src>
import math

import jax
import jax.numpy as jnp
from jax.experimental import pallas as pl
from jax.experimental.pallas import tpu as pltpu


# ----------------------------- kernel helpers ------------------------------


def _gelu_erf(x):
    """Exact (erf-based) GELU, matching torch.nn.GELU() default."""
    z = x * jnp.float32(0.7071067811865476)
    az = jnp.abs(z)
    t = 1.0 / (1.0 + jnp.float32(0.3275911) * az)
    poly = t * (jnp.float32(0.254829592)
                + t * (jnp.float32(-0.284496736)
                       + t * (jnp.float32(1.421413741)
                              + t * (jnp.float32(-1.453152027)
                                     + t * jnp.float32(1.061405429)))))
    erf_abs = 1.0 - poly * jnp.exp(-az * az)
    erf_z = jnp.where(z >= 0, erf_abs, -erf_abs)
    return jnp.float32(0.5) * x * (1.0 + erf_z)


def _mlp_kernel(x_ref, w1_ref, b1_ref, w2_ref, b2_ref, o_ref):
    """Fused fc1 -> GELU -> fc2 for one tile of rows (dropout inactive)."""
    x = x_ref[...].astype(jnp.float32)
    h = jnp.dot(x, w1_ref[...].astype(jnp.float32),
                preferred_element_type=jnp.float32)
    h = h + b1_ref[...].astype(jnp.float32)
    h = _gelu_erf(h)
    o = jnp.dot(h, w2_ref[...].astype(jnp.float32),
                preferred_element_type=jnp.float32)
    o = o + b2_ref[...].astype(jnp.float32)
    o_ref[...] = o.astype(o_ref.dtype)


def _mlp_dropout_kernel(x_ref, w1_ref, b1_ref, w2_ref, b2_ref,
                        m1_ref, m2_ref, o_ref):
    """Fused fc1 -> GELU -> dropout -> fc2 -> dropout (masks precomputed)."""
    x = x_ref[...].astype(jnp.float32)
    h = jnp.dot(x, w1_ref[...].astype(jnp.float32),
                preferred_element_type=jnp.float32)
    h = h + b1_ref[...].astype(jnp.float32)
    h = _gelu_erf(h) * m1_ref[...]
    o = jnp.dot(h, w2_ref[...].astype(jnp.float32),
                preferred_element_type=jnp.float32)
    o = o + b2_ref[...].astype(jnp.float32)
    o = o * m2_ref[...]
    o_ref[...] = o.astype(o_ref.dtype)


# --------------------------------- wrapper ---------------------------------


def mlp_pallas(x, w1, b1, w2, b2, *, drop=0.0, training=False,
               dropout_masks=None, dropout_key=None, block_rows=256):
    """Pallas implementation of Mlp.forward.

    x:  (..., in_features)
    w1: (in_features, hidden)   b1: (hidden,)
    w2: (hidden, out_features)  b2: (out_features,)
    """
    d_in, hidden = w1.shape
    d_out = w2.shape[1]
    assert x.shape[-1] == d_in

    lead = x.shape[:-1]
    x2 = x.reshape(-1, d_in)          # free reshape, no HBM copy
    M = x2.shape[0]

    # Row tiling: whole extent for small inputs, otherwise block_rows-row
    # tiles (multiple of 8 sublanes).  Feature dims use the "equal to full
    # array dim" escape of the (8,128) rule.
    # TODO(synk): add hidden/out-dim (K/N) tiling for large feature sizes so
    # the resident weight blocks stay within v7x's 32 MiB scoped VMEM.
    tm = M if M <= block_rows else block_rows
    grid = (pl.cdiv(M, tm),)

    b1_2 = b1.reshape(1, hidden)
    b2_2 = b2.reshape(1, d_out)

    in_specs = [
        pl.BlockSpec((tm, d_in), lambda i: (i, 0)),        # x row tile
        pl.BlockSpec((d_in, hidden), lambda i: (0, 0)),    # w1 (resident)
        pl.BlockSpec((1, hidden), lambda i: (0, 0)),       # b1 (resident)
        pl.BlockSpec((hidden, d_out), lambda i: (0, 0)),   # w2 (resident)
        pl.BlockSpec((1, d_out), lambda i: (0, 0)),        # b2 (resident)
    ]
    out_spec = pl.BlockSpec((tm, d_out), lambda i: (i, 0))
    args = [x2, w1, b1_2, w2, b2_2]

    use_dropout = bool(training) and float(drop) > 0.0
    if use_dropout:
        keep = 1.0 - float(drop)
        if dropout_masks is not None:
            m1, m2 = dropout_masks
        else:
            if dropout_key is None:
                raise ValueError("training with drop > 0 requires "
                                 "dropout_masks or dropout_key")
            k1, k2 = jax.random.split(dropout_key)
            m1 = jax.random.bernoulli(k1, keep, (M, hidden)).astype(jnp.float32) / keep
            m2 = jax.random.bernoulli(k2, keep, (M, d_out)).astype(jnp.float32) / keep
        m1 = jnp.asarray(m1, jnp.float32).reshape(M, hidden)
        m2 = jnp.asarray(m2, jnp.float32).reshape(M, d_out)
        in_specs += [
            pl.BlockSpec((tm, hidden), lambda i: (i, 0)),
            pl.BlockSpec((tm, d_out), lambda i: (i, 0)),
        ]
        args += [m1, m2]
        kernel = _mlp_dropout_kernel
    else:
        kernel = _mlp_kernel

    out2 = pl.pallas_call(
        kernel,
        out_shape=jax.ShapeDtypeStruct((M, d_out), x.dtype),
        grid=grid,
        in_specs=in_specs,
        out_specs=out_spec,
        compiler_params=pltpu.CompilerParams(
            dimension_semantics=("parallel",),
        ),
    )(*args)

    return out2.reshape(lead + (d_out,))


# ------------------------------ module analog -------------------------------


class Mlp:
    """JAX/Pallas analog of the PyTorch Mlp module (fc1 -> GELU -> drop -> fc2 -> drop)."""

    def __init__(self, in_features, hidden_features=None, out_features=None,
                 drop=0.0, *, key, dtype=jnp.float32):
        out_features = out_features or in_features
        hidden_features = hidden_features or in_features
        k1, k2, k3, k4 = jax.random.split(key, 4)
        bnd1 = 1.0 / math.sqrt(in_features)
        bnd2 = 1.0 / math.sqrt(hidden_features)
        # PyTorch nn.Linear default init: U(-1/sqrt(fan_in), 1/sqrt(fan_in)).
        self.w1 = jax.random.uniform(k1, (in_features, hidden_features), dtype, -bnd1, bnd1)
        self.b1 = jax.random.uniform(k2, (hidden_features,), dtype, -bnd1, bnd1)
        self.w2 = jax.random.uniform(k3, (hidden_features, out_features), dtype, -bnd2, bnd2)
        self.b2 = jax.random.uniform(k4, (out_features,), dtype, -bnd2, bnd2)
        self.drop = float(drop)

    def __call__(self, x, *, training=False, dropout_masks=None, dropout_key=None):
        return mlp_pallas(x, self.w1, self.b1, self.w2, self.b2,
                          drop=self.drop, training=training,
                          dropout_masks=dropout_masks, dropout_key=dropout_key)


# ------------------------------ pure-JAX reference --------------------------


def _mlp_reference(x, w1, b1, w2, b2, m1=None, m2=None):
    x2 = x.reshape(-1, w1.shape[0]).astype(jnp.float32)
    h = jax.nn.gelu(x2 @ w1.astype(jnp.float32) + b1.astype(jnp.float32),
                    approximate=False)
    if m1 is not None:
        h = h * m1
    o = h @ w2.astype(jnp.float32) + b2.astype(jnp.float32)
    if m2 is not None:
        o = o * m2
    return o.reshape(x.shape[:-1] + (w2.shape[1],)).astype(x.dtype)


if __name__ == "__main__":
    root = jax.random.PRNGKey(0)
    k_x, k_params, k_drop = jax.random.split(root, 3)

    # small shapes implied by the module: batch=2, seq=8, in=32, hidden=64, out=32
    B, S, C, H = 2, 8, 32, 64
    x = jax.random.normal(k_x, (B, S, C), dtype=jnp.float32)

    mlp = Mlp(C, hidden_features=H, out_features=C, drop=0.1, key=k_params)

    # --- inference path (dropout inactive, like PyTorch .eval() / drop=0) ---
    y = jax.block_until_ready(mlp(x, training=False))
    y_ref = _mlp_reference(x, mlp.w1, mlp.b1, mlp.w2, mlp.b2)
    assert y.shape == y_ref.shape
    # loose tolerance: MXU f32 matmul precision may differ slightly from XLA's
    assert bool(jnp.allclose(y, y_ref, rtol=1e-2, atol=1e-2)), "inference mismatch"

    # --- training path with explicit, deterministic dropout masks ---
    keep = 1.0 - mlp.drop
    k1, k2 = jax.random.split(k_drop)
    m1 = jax.random.bernoulli(k1, keep, (B * S, H)).astype(jnp.float32) / keep
    m2 = jax.random.bernoulli(k2, keep, (B * S, C)).astype(jnp.float32) / keep
    y_tr = jax.block_until_ready(mlp(x, training=True, dropout_masks=(m1, m2)))
    y_tr_ref = _mlp_reference(x, mlp.w1, mlp.b1, mlp.w2, mlp.b2, m1, m2)
    assert bool(jnp.allclose(y_tr, y_tr_ref, rtol=1e-2, atol=1e-2)), "training mismatch"

    print("KERNEL_OK")
</pallas_src>

<mosaic_0001>
module attributes {stable_mosaic.version = 11 : i64} {
  func.func @_mlp_kernel(%arg0: i32, %arg1: memref<16x32xf32, #tpu.memory_space<vmem>>, %arg2: memref<32x64xf32, #tpu.memory_space<vmem>>, %arg3: memref<1x64xf32, #tpu.memory_space<vmem>>, %arg4: memref<64x32xf32, #tpu.memory_space<vmem>>, %arg5: memref<1x32xf32, #tpu.memory_space<vmem>>, %arg6: memref<16x32xf32, #tpu.memory_space<vmem>>) attributes {dimension_semantics = [#tpu.dimension_semantics<parallel>], iteration_bounds = array<i64: 1>, scalar_prefetch = 0 : i64, scratch_operands = 0 : i64, tpu.core_type = #tpu.core_type<tc>, window_params = [{transform_indices = @transform_0, window_bounds = array<i64: 16, 32>}, {pipeline_mode = #tpu.pipeline_mode<synchronous>, transform_indices = @transform_1, window_bounds = array<i64: 32, 64>}, {pipeline_mode = #tpu.pipeline_mode<synchronous>, transform_indices = @transform_2, window_bounds = array<i64: 1, 64>}, {pipeline_mode = #tpu.pipeline_mode<synchronous>, transform_indices = @transform_3, window_bounds = array<i64: 64, 32>}, {pipeline_mode = #tpu.pipeline_mode<synchronous>, transform_indices = @transform_4, window_bounds = array<i64: 1, 32>}, {transform_indices = @transform_5, window_bounds = array<i64: 16, 32>}]} {
    %c0 = arith.constant 0 : index
    %c0_0 = arith.constant 0 : index
    %0 = vector.load %arg1[%c0, %c0_0] : memref<16x32xf32, #tpu.memory_space<vmem>>, vector<16x32xf32>
    %c0_1 = arith.constant 0 : index
    %c0_2 = arith.constant 0 : index
    %1 = vector.load %arg2[%c0_1, %c0_2] : memref<32x64xf32, #tpu.memory_space<vmem>>, vector<32x64xf32>
    %cst = arith.constant dense<0.000000e+00> : vector<16x64xf32>
    %2 = tpu.matmul %0, %1, %cst {dimension_numbers = #tpu.dot_dimension_numbers<[1], [0], [0], [1], [0, 0, 1, 1], [], []>} : vector<16x32xf32>, vector<32x64xf32>, vector<16x64xf32> -> vector<16x64xf32>
    %c0_3 = arith.constant 0 : index
    %c0_4 = arith.constant 0 : index
    %3 = vector.load %arg3[%c0_3, %c0_4] : memref<1x64xf32, #tpu.memory_space<vmem>>, vector<1x64xf32>
    %4 = vector.broadcast %3 : vector<1x64xf32> to vector<16x64xf32>
    %5 = arith.addf %2, %4 : vector<16x64xf32>
    %cst_5 = arith.constant 0.707106769 : f32
    %6 = vector.broadcast %cst_5 : f32 to vector<16x64xf32>
    %7 = arith.mulf %5, %6 : vector<16x64xf32>
    %8 = math.absf %7 : vector<16x64xf32>
    %cst_6 = arith.constant 0.327591091 : f32
    %9 = vector.broadcast %cst_6 : f32 to vector<16x64xf32>
    %10 = arith.mulf %9, %8 : vector<16x64xf32>
    %cst_7 = arith.constant 1.000000e+00 : f32
    %11 = vector.broadcast %cst_7 : f32 to vector<16x64xf32>
    %12 = arith.addf %11, %10 : vector<16x64xf32>
    %cst_8 = arith.constant 1.000000e+00 : f32
    %13 = vector.broadcast %cst_8 : f32 to vector<16x64xf32>
    %14 = arith.divf %13, %12 : vector<16x64xf32>
    %cst_9 = arith.constant 1.06140542 : f32
    %15 = vector.broadcast %cst_9 : f32 to vector<16x64xf32>
    %16 = arith.mulf %14, %15 : vector<16x64xf32>
    %cst_10 = arith.constant -1.45315206 : f32
    %17 = vector.broadcast %cst_10 : f32 to vector<16x64xf32>
    %18 = arith.addf %17, %16 : vector<16x64xf32>
    %19 = arith.mulf %14, %18 : vector<16x64xf32>
    %cst_11 = arith.constant 1.42141378 : f32
    %20 = vector.broadcast %cst_11 : f32 to vector<16x64xf32>
    %21 = arith.addf %20, %19 : vector<16x64xf32>
    %22 = arith.mulf %14, %21 : vector<16x64xf32>
    %cst_12 = arith.constant -0.284496725 : f32
    %23 = vector.broadcast %cst_12 : f32 to vector<16x64xf32>
    %24 = arith.addf %23, %22 : vector<16x64xf32>
    %25 = arith.mulf %14, %24 : vector<16x64xf32>
    %cst_13 = arith.constant 0.254829586 : f32
    %26 = vector.broadcast %cst_13 : f32 to vector<16x64xf32>
    %27 = arith.addf %26, %25 : vector<16x64xf32>
    %28 = arith.mulf %14, %27 : vector<16x64xf32>
    %cst_14 = arith.constant 0.000000e+00 : f32
    %29 = vector.broadcast %cst_14 : f32 to vector<16x64xf32>
    %30 = arith.subf %29, %8 : vector<16x64xf32>
    %31 = arith.mulf %30, %8 : vector<16x64xf32>
    %32 = math.exp %31 : vector<16x64xf32>
    %33 = arith.mulf %28, %32 : vector<16x64xf32>
    %cst_15 = arith.constant 1.000000e+00 : f32
    %34 = vector.broadcast %cst_15 : f32 to vector<16x64xf32>
    %35 = arith.subf %34, %33 : vector<16x64xf32>
    %cst_16 = arith.constant 0.000000e+00 : f32
    %36 = vector.broadcast %cst_16 : f32 to vector<16x64xf32>
    %37 = arith.cmpf oge, %7, %36 : vector<16x64xf32>
    %cst_17 = arith.constant 0.000000e+00 : f32
    %38 = vector.broadcast %cst_17 : f32 to vector<16x64xf32>
    %39 = arith.subf %38, %35 : vector<16x64xf32>
    %40 = arith.select %37, %35, %39 : vector<16x64xi1>, vector<16x64xf32>
    %cst_18 = arith.constant 5.000000e-01 : f32
    %41 = vector.broadcast %cst_18 : f32 to vector<16x64xf32>
    %42 = arith.mulf %41, %5 : vector<16x64xf32>
    %cst_19 = arith.constant 1.000000e+00 : f32
    %43 = vector.broadcast %cst_19 : f32 to vector<16x64xf32>
    %44 = arith.addf %43, %40 : vector<16x64xf32>
    %45 = arith.mulf %42, %44 : vector<16x64xf32>
    %c0_20 = arith.constant 0 : index
    %c0_21 = arith.constant 0 : index
    %46 = vector.load %arg4[%c0_20, %c0_21] : memref<64x32xf32, #tpu.memory_space<vmem>>, vector<64x32xf32>
    %cst_22 = arith.constant dense<0.000000e+00> : vector<16x32xf32>
    %47 = tpu.matmul %45, %46, %cst_22 {dimension_numbers = #tpu.dot_dimension_numbers<[1], [0], [0], [1], [0, 0, 1, 1], [], []>} : vector<16x64xf32>, vector<64x32xf32>, vector<16x32xf32> -> vector<16x32xf32>
    %c0_23 = arith.constant 0 : index
    %c0_24 = arith.constant 0 : index
    %48 = vector.load %arg5[%c0_23, %c0_24] : memref<1x32xf32, #tpu.memory_space<vmem>>, vector<1x32xf32>
    %49 = vector.broadcast %48 : vector<1x32xf32> to vector<16x32xf32>
    %50 = arith.addf %47, %49 : vector<16x32xf32>
    %c0_25 = arith.constant 0 : index
    %c0_26 = arith.constant 0 : index
    %51 = vector.load %arg6[%c0_25, %c0_26] : memref<16x32xf32, #tpu.memory_space<vmem>>, vector<16x32xf32>
    tpu.vector_store %arg6[%c0_25, %c0_26], %50 {strides = array<i32>} : memref<16x32xf32, #tpu.memory_space<vmem>>, vector<16x32xf32>,
    return
  }
  func.func @transform_0(%arg0: i32) -> (i32, i32) {
    %c0_i32 = arith.constant 0 : i32
    %c0_i32_0 = arith.constant 0 : i32
    return %arg0, %c0_i32 : i32, i32
  }
  func.func @transform_1(%arg0: i32) -> (i32, i32) {
    %c0_i32 = arith.constant 0 : i32
    %c0_i32_0 = arith.constant 0 : i32
    %c0_i32_1 = arith.constant 0 : i32
    return %c0_i32, %c0_i32_0 : i32, i32
  }
  func.func @transform_2(%arg0: i32) -> (i32, i32) {
    %c0_i32 = arith.constant 0 : i32
    %c0_i32_0 = arith.constant 0 : i32
    %c0_i32_1 = arith.constant 0 : i32
    return %c0_i32, %c0_i32_0 : i32, i32
  }
  func.func @transform_3(%arg0: i32) -> (i32, i32) {
    %c0_i32 = arith.constant 0 : i32
    %c0_i32_0 = arith.constant 0 : i32
    %c0_i32_1 = arith.constant 0 : i32
    return %c0_i32, %c0_i32_0 : i32, i32
  }
  func.func @transform_4(%arg0: i32) -> (i32, i32) {
    %c0_i32 = arith.constant 0 : i32
    %c0_i32_0 = arith.constant 0 : i32
    %c0_i32_1 = arith.constant 0 : i32
    return %c0_i32, %c0_i32_0 : i32, i32
  }
  func.func @transform_5(%arg0: i32) -> (i32, i32) {
    %c0_i32 = arith.constant 0 : i32
    %c0_i32_0 = arith.constant 0 : i32
    return %arg0, %c0_i32 : i32, i32
  }
}

</mosaic_0001>

<bundles_post_ra>
// kernel: tpu_custom_call.1
= control target key start
LH: loop header
LB: loop body
LE: loop exit
PB: predicated region body
PF: predicated region fallthrough
CT: control target
= control target key end

     0   :  { %s362_s0 = inlined_call_operand.vmem [shape: f32[16,32], index: 0, kind: input, shape index: {}]   ;;  %s363_s1 = inlined_call_operand.vmem [shape: f32[32,64], index: 1, kind: input, shape index: {}]   ;;  %s364_s2 = inlined_call_operand.vmem [shape: f32[1,64], index: 2, kind: input, shape index: {}]   ;;  %s365_s3 = inlined_call_operand.vmem [shape: f32[64,32], index: 3, kind: input, shape index: {}]   ;;  %s366_s4 = inlined_call_operand.vmem [shape: f32[1,32], index: 4, kind: input, shape index: {}]   ;;  %s367_s5 = inlined_call_operand.hbm [shape: f32[16,32], index: 5, kind: output, shape index: {}]  }
   0x1   :  { %v26_v0 = vld [vmem:[%s363_s1 + $0x18] sm:$0xff]  ;;  %v25_v1 = vld [vmem:[%s363_s1 + $0x10] sm:$0xff]  ;;  %v24_v2 = vld [vmem:[%s363_s1 + $0x8] sm:$0xff] }
   0x2   :  { %50 = vmatpush.msra.mxu0 %v26_v0  ;;  %207 = vmatpush.msra.mxu3 %v26_v0 }
   0x4   :  { %51 = vmatpush.msra.mxu0 %v25_v1  ;;  %208 = vmatpush.msra.mxu3 %v25_v1 }
   0x5   :  { %10 = vsyncpa [#allocation3], 0  ;;  %v23_v3 = vld [vmem:[%s363_s1] sm:$0xff]  ;;  %vm31_vm0 = vcmask 261120   ;;  %v22_v5 = vld [vmem:[%s362_s0 + $0x8] sm:$0xff]  ;;  %vm153_vm10 = vcmask 523264  }
   0x6   :  { %52 = vmatpush.msra.mxu0 %v24_v2  ;;  %209 = vmatpush.msra.mxu3 %v24_v2  ;;  %v21_v4 = vld [vmem:[%s362_s0] sm:$0xff]  ;;  %v148_v7 = vld [vmem:[%s365_s3 + $0x38] sm:$0xff]  ;;  %v147_v8 = vld [vmem:[%s365_s3 + $0x30] sm:$0xff]  ;;  %s258_s21 = smov [#allocation2]   ;;  %s191_s25 = sshll.u32 %s367_s5, 4  ;;  %s192_s25 = int_to_ptr.hbm [resolvable:$true] %s191_s25 }
   0x7   :  { %v222_v6 = vld [vmem:[%s364_s2] ss:$0 sm:$0xff]  ;;  %168 = vmatpush.msra.mxu1 %v148_v7  ;;  %211 = vmatpush.msra.mxu2 %v148_v7  ;;  %v146_v9 = vld [vmem:[%s365_s3 + $0x28] sm:$0xff]  ;;  %v144_v14 = vld [vmem:[%s365_s3 + $0x18] sm:$0xff]  ;;  %s189_s22 = sshll.u32 %s258_s21, 4  ;;  %s259_s26 = smov 128   ;;  %s190_s22 = int_to_ptr.vmem [resolvable:$true] %s189_s22 }
   0x8   :  { %53 = vmatpush.msra.mxu0 %v23_v3  ;;  %210 = vmatpush.msra.mxu3 %v23_v3  ;;  %v145_v12 = vld [vmem:[%s365_s3 + $0x20] sm:$0xff]  ;;  %v143_v16 = vld [vmem:[%s365_s3 + $0x10] sm:$0xff]  ;;  %v142_v20 = vld [vmem:[%s365_s3 + $0x8] sm:$0xff]  ;;  %s260_s27 = smov 8  }
   0x9   :  { %203 = vmatmul.msk.f32.vlgmr.msra.gmra.mxu0 %vm31_vm0, %v21_v4  ;;  %204 = vmatmul.msk.f32.vlgmr.msra.gmra.mxu3 %vm31_vm0, %v22_v5  ;;  %v141_v23 = vld [vmem:[%s365_s3] sm:$0xff] }
   0xa   :  { %169 = vmatpush.msra.mxu1 %v147_v8  ;;  %212 = vmatpush.msra.mxu2 %v147_v8 }
   0xc   :  { %170 = vmatpush.msra.mxu1 %v146_v9  ;;  %213 = vmatpush.msra.mxu2 %v146_v9 }
   0xe   :  { %171 = vmatpush.msra.mxu1 %v145_v12  ;;  %214 = vmatpush.msra.mxu2 %v145_v12 }
  0x10   :  { %172 = vmatpush.msra.mxu1 %v144_v14  ;;  %215 = vmatpush.msra.mxu2 %v144_v14 }
  0x12   :  { %173 = vmatpush.msra.mxu1 %v143_v16  ;;  %216 = vmatpush.msra.mxu2 %v143_v16 }
  0x14   :  { %174 = vmatpush.msra.mxu1 %v142_v20  ;;  %217 = vmatpush.msra.mxu2 %v142_v20 }
  0x16   :  { %175 = vmatpush.msra.mxu1 %v141_v23  ;;  %218 = vmatpush.msra.mxu2 %v141_v23 }
  0x86   :  { %v55_v10 = vpop.f32.mrf.mxu0 }
  0x87   :  { %v323_v11 = vadd.f32 %v222_v6, %v55_v10 }
  0x89   :  { %v329_v13 = vmul.f32 0.70710677, %v323_v11 }
  0x8b   :  { %v63_v15 = vand.u32 2147483647, %v329_v13  ;;  %vm129_vm9 = vcmp.ge.f32.partialorder %v329_v13, 0.0  ;;  %v223_v13 = vld [vmem:[%s366_s4] ss:$0 sm:$0xff] }
  0x8c   :  { %v58_v17 = vpop.f32.mrf.mxu3 }
  0x8d   :  { %v65_v18 = vmul.f32 0.3275911, %v63_v15  ;;  %v338_v19 = vadd.f32 %v222_v6, %v58_v17  ;;  %v117_v38 = vsub.f32 0.0, %v63_v15 }
  0x8f   :  { %v67_v21 = vadd.f32 1.0, %v65_v18  ;;  %v344_v22 = vmul.f32 0.70710677, %v338_v19  ;;  %v119_v46 = vmul.f32 %v117_v38, %v63_v15  ;;  %v135_v15 = vmul.f32 0.5, %v323_v11 }
  0x91   :  { %224 = vrcp.f32 %v67_v21  ;;  %v64_v24 = vand.u32 2147483647, %v344_v22  ;;  %v80_v29 = vand.u32 2147483648, %v67_v21  ;;  %vm74_vm1 = vweird.f32 %v67_v21 }
  0x92   :  { %v78_v31 = vand.u32 2147483647, %v67_v21  ;;  %v121_v54 = vmul.f32 1.442695, %v119_v46  ;;  %vm130_vm11 = vcmp.ge.f32.partialorder %v344_v22, 0.0 }
  0x93   :  { %v66_v25 = vmul.f32 0.3275911, %v64_v24  ;;  %v81_v33 = vor.u32 1.1754944e-38, %v80_v29  ;;  %v118_v51 = vsub.f32 0.0, %v64_v24 }
  0x94   :  { %vm79_vm4 = vcmp.eq.f32.partialorder %v78_v31, 8.507059e+37 }
  0x95   :  { %v68_v26 = vadd.f32 1.0, %v66_v25  ;;  %v120_v58 = vmul.f32 %v118_v51, %v64_v24  ;;  %v136_v24 = vmul.f32 0.5, %v338_v19 }
  0x97   :  { %v225_v27 = vpop.eup %224  ;;  %226 = vrcp.f32 %v68_v26  ;;  %v95_v41 = vand.u32 2147483648, %v68_v26  ;;  %v93_v44 = vand.u32 2147483647, %v68_v26  ;;  %vm89_vm6 = vweird.f32 %v68_v26 }
  0x98   :  { %v70_v28 = vmul.f32 %v225_v27, %v67_v21  ;;  %vm75_vm2 = vweird.f32 %v225_v27  ;;  %228 = vpow2.f32 %v121_v54  ;;  %v123_v63 = vmul.f32 1.442695, %v120_v58 }
  0x99   :  { %vm76_vm3 = vmor %vm74_vm1, %vm75_vm2  ;;  %v96_v48 = vor.u32 1.1754944e-38, %v95_v41  ;;  %vm94_vm8 = vcmp.eq.f32.partialorder %v93_v44, 8.507059e+37 }
  0x9a   :  { %v71_v30 = vsub.f32 1.0, %v70_v28  ;;  %230 = vpow2.f32 %v123_v63 }
  0x9c   :  { %v72_v32 = vmul.f32 %v225_v27, %v71_v30 }
  0x9d   :  { %v227_v34 = vpop.eup %226 }
  0x9e   :  { %v73_v35 = vadd.f32 %v225_v27, %v72_v32  ;;  %v85_v36 = vmul.f32 %v227_v34, %v68_v26  ;;  %vm90_vm5 = vweird.f32 %v227_v34  ;;  %v229_v3 = vpop.eup %228 }
  0x9f   :  { %vm91_vm7 = vmor %vm89_vm6, %vm90_vm5 }
  0xa0   :  { %v77_v37 = vsel %vm76_vm3, %v225_v27, %v73_v35  ;;  %v86_v39 = vsub.f32 1.0, %v85_v36  ;;  %v231_v12 = vpop.eup %230 }
  0xa1   :  { %v82_v40 = vsel %vm79_vm4, %v81_v33, %v77_v37 }
  0xa2   :  { %v99_v42 = vmul.f32 1.0614054, %v82_v40  ;;  %v87_v43 = vmul.f32 %v227_v34, %v86_v39 }
  0xa4   :  { %v101_v45 = vadd.f32 -1.4531521, %v99_v42  ;;  %v88_v47 = vadd.f32 %v227_v34, %v87_v43 }
  0xa6   :  { %v103_v49 = vmul.f32 %v101_v45, %v82_v40  ;;  %v92_v50 = vsel %vm91_vm7, %v227_v34, %v88_v47 }
  0xa7   :  { %v97_v53 = vsel %vm94_vm8, %v96_v48, %v92_v50 }
  0xa8   :  { %v105_v52 = vadd.f32 1.4214138, %v103_v49  ;;  %v100_v55 = vmul.f32 1.0614054, %v97_v53 }
  0xaa   :  { %v107_v56 = vmul.f32 %v105_v52, %v82_v40  ;;  %v102_v57 = vadd.f32 -1.4531521, %v100_v55 }
  0xac   :  { %v109_v59 = vadd.f32 -0.28449672, %v107_v56  ;;  %v104_v60 = vmul.f32 %v102_v57, %v97_v53 }
  0xae   :  { %v111_v61 = vmul.f32 %v109_v59, %v82_v40  ;;  %v106_v62 = vadd.f32 1.4214138, %v104_v60 }
  0xb0   :  { %v113_v0 = vadd.f32 0.2548296, %v111_v61  ;;  %v108_v1 = vmul.f32 %v106_v62, %v97_v53 }
  0xb2   :  { %v115_v2 = vmul.f32 %v113_v0, %v82_v40  ;;  %v110_v4 = vadd.f32 -0.28449672, %v108_v1 }
  0xb4   :  { %v125_v5 = vmul.f32 %v229_v3, %v115_v2  ;;  %v112_v6 = vmul.f32 %v110_v4, %v97_v53 }
  0xb6   :  { %v127_v7 = vsub.f32 1.0, %v125_v5  ;;  %v114_v8 = vadd.f32 0.2548296, %v112_v6 }
  0xb8   :  { %v131_v9 = vsub.f32 0.0, %v127_v7  ;;  %v116_v10 = vmul.f32 %v114_v8, %v97_v53 }
  0xba   :  { %v133_v14 = vsel %vm129_vm9, %v127_v7, %v131_v9  ;;  %v126_v17 = vmul.f32 %v231_v12, %v116_v10 }
  0xbb   :  { %v137_v16 = vadd.f32 1.0, %v133_v14 }
  0xbc   :  { %v128_v20 = vsub.f32 1.0, %v126_v17 }
  0xbd   :  { %v139_v18 = vmul.f32 %v137_v16, %v135_v15 }
  0xbe   :  { %v132_v21 = vsub.f32 0.0, %v128_v20 }
  0xbf   :  { %205 = vmatmul.msk.f32.vlgmr.msra.gmra.mxu1 %vm153_vm10, %v139_v18 }
  0xc0   :  { %v134_v23 = vsel %vm130_vm11, %v128_v20, %v132_v21 }
  0xc1   :  { %v138_v25 = vadd.f32 1.0, %v134_v23 }
  0xc3   :  { %v140_v26 = vmul.f32 %v138_v25, %v136_v24 }
  0xc5   :  { %206 = vmatmul.msk.f32.vlgmr.msra.gmra.mxu2 %vm153_vm10, %v140_v26 }
 0x13c   :  { %v177_v11 = vpop.f32.mrf.mxu1 }
 0x13d   :  { %v178_v27 = vadd.f32 %v223_v13, %v177_v11 }
 0x13f   :  { %183 = vst.msk [vmem:[#allocation2] sm:$0xff] %vm31_vm0, %v178_v27 }
 0x148   :  { %v180_v22 = vpop.f32.mrf.mxu2 }
 0x149   :  { %v181_v19 = vadd.f32 %v223_v13, %v180_v22 }
 0x14b   :  { %184 = vst.msk [vmem:[#allocation2 + $0x8] sm:$0xff] %vm31_vm0, %v181_v19 }
 0x14c   :  { %197 = dma.vmem_to_hbm [thread:$0]  %s190_s22, 256, %s192_s25, [#allocation3], %s259_s26, %s259_s26, %s260_s27  }
 0x14d   :  { %256 = dma.done.wait [#allocation3], 256  }
 0x14e   :  { %257 = vsyncadd [#allocation3], 4294967040 }
 0x14f   :  { %202 = vsyncpa [#allocation3], 1 }

</bundles_post_ra>
